<compile_context>
chip_gen: v5e
topology: v5e:2x2
jax: 0.10.0
libtpu: 0.0.40
codegen_flags: <defaults>
</compile_context>

<pallas_src>
import functools

import jax
import jax.numpy as jnp
from jax import lax
from jax.experimental import pallas as pl
from jax.experimental.pallas import tpu as pltpu


_SUBLANES = 8
_LANES = 128


def _focal_loss_kernel(logits_ref, targets_ref, out_ref,
                       *, alpha, gamma, gamma_is_int, total_n,
                       tile_n, tiles_per_split):
    split = pl.program_id(0)   # core-split axis ("parallel")
    i = pl.program_id(1)       # sequential reduction axis ("arbitrary")

    @pl.when(i == 0)
    def _():
        out_ref[...] = jnp.zeros_like(out_ref)

    # Logical rows of this grid step.  The DMA block index is clamped in the
    # index_map, but the row ids here stay logical, so any row >= total_n is
    # always masked out regardless of what data was actually loaded.
    base_row = (split * tiles_per_split + i) * tile_n
    row_ids = base_row + lax.broadcasted_iota(jnp.int32, (tile_n, 1), 0)
    row_mask = row_ids < total_n                                     # (tile_n, 1)

    logits = logits_ref[...].astype(jnp.float32)                     # (tile_n, C)
    logits = jnp.where(row_mask, logits, 0.0)    # neutralize padded-row garbage pre-exp/log
    tgt_idx = targets_ref[...]                                       # (tile_n, 1) int32

    # one-hot select of the target column (no gather needed)
    class_ids = lax.broadcasted_iota(jnp.int32, logits.shape, 1)
    onehot = class_ids == tgt_idx                                    # (tile_n, C)

    # stable log-sum-exp for the cross entropy
    m = jnp.max(logits, axis=-1, keepdims=True)                      # (tile_n, 1)
    e = jnp.exp(logits - m)                                          # (tile_n, C)
    sumexp = jnp.sum(e, axis=-1, keepdims=True)                      # (tile_n, 1)
    tgt_logit = jnp.sum(jnp.where(onehot, logits, 0.0), axis=-1, keepdims=True)

    ce = jnp.maximum(jnp.log(sumexp) + m - tgt_logit, 0.0)           # cross-entropy >= 0
    # pt as a narrow per-row exp (EUP slot) instead of a second full-width
    # one-hot select + cross-lane sum over the exp table.
    pt = jnp.exp(-ce)                                                # (tile_n, 1), in [0, 1]
    base = jnp.maximum(1.0 - pt, 0.0)

    if gamma_is_int:                       # static python branch
        g = int(gamma)
        if g == 0:
            w = jnp.ones_like(base)
        else:
            w = base
            for _ in range(g - 1):         # e.g. gamma=2 -> base*base (VPU only)
                w = w * base
    else:
        w = jnp.power(base, gamma)         # base already clamped >= 0

    focal = jnp.where(row_mask, alpha * w * ce, 0.0)                 # (tile_n, 1)

    # accumulate straight into the resident per-split output block
    out_ref[...] = out_ref[...] + jnp.sum(focal)


def _round_up(x, m):
    return ((x + m - 1) // m) * m


def _cdiv(a, b):
    return -(-a // b)


def _vmem_capacity_bytes():
    """Physical VMEM per TensorCore (conservative 64 MiB fallback = v7x)."""
    try:
        info = pltpu.get_tpu_info()
        for name in ("vmem_capacity_bytes", "vmem_size_bytes", "vmem_bytes"):
            v = getattr(info, name, None)
            if v:
                return int(v)
    except Exception:
        pass
    return 64 << 20


def _num_tensorcores():
    """2 on multi-TensorCore parts (v4 / v5p / v7x), 1 on v5e / v6e."""
    try:
        kind = jax.devices()[0].device_kind.lower()
    except Exception:
        return 1
    if any(t in kind for t in ("v7", "tpu7", "v4", "v5p")):
        return 2
    return 1


def _choose_tile_n(n, c_pad, in_bytes, num_splits, vmem_phys):
    # Per-row VMEM footprint: double-buffered native-dtype input tile plus
    # ~3 full-width f32 compute temporaries (f32 logits, exp table, selects).
    per_row = c_pad * (2 * in_bytes + 3 * 4)
    # Generation-aware budget: ~3/8 of physical VMEM (48 MiB on 128-MiB
    # v5e/v6e, 24 MiB on 64-MiB v7x), clamped.
    budget = max(16 << 20, min((vmem_phys * 3) // 8, 48 << 20))
    cap = max(_SUBLANES, (budget // per_row) // _SUBLANES * _SUBLANES)
    cap = min(cap, 8192)                   # >=1-2 MiB of logits per tile when C is small
    per_split = _cdiv(n, num_splits)
    return max(_SUBLANES, min(cap, _round_up(per_split, _SUBLANES)))


def focal_loss(logits, targets, *, alpha=1.0, gamma=2.0, reduction="mean"):
    """logits: (N, C) float, targets: (N,) int. Matches the PyTorch FocalLoss forward."""
    n, c = logits.shape
    in_bytes = jnp.dtype(logits.dtype).itemsize
    c_pad = _round_up(c, _LANES)
    vmem_phys = _vmem_capacity_bytes()

    num_splits = _num_tensorcores()
    tile_n = _choose_tile_n(n, c_pad, in_bytes, num_splits, vmem_phys)
    tiles_per_split = max(1, _cdiv(n, num_splits * tile_n))
    # If the last split would own zero real rows (tiny N), drop the split.
    if num_splits > 1 and (num_splits - 1) * tiles_per_split * tile_n >= n:
        num_splits = 1
        tile_n = _choose_tile_n(n, c_pad, in_bytes, 1, vmem_phys)
        tiles_per_split = max(1, _cdiv(n, tile_n))

    # Last in-bounds block index; index_maps clamp to it so no grid step DMAs
    # a block that starts past the end of the (un-padded) inputs.
    last_block = _cdiv(n, tile_n) - 1

    # No wrapper-side pad / upcast of logits; targets just get a cheap reshape.
    targets_2d = targets.astype(jnp.int32).reshape(n, 1)

    gamma_f = float(gamma)
    gamma_is_int = gamma_f.is_integer() and 0.0 <= gamma_f <= 8.0

    kernel = functools.partial(
        _focal_loss_kernel,
        alpha=float(alpha),
        gamma=gamma_f,
        gamma_is_int=gamma_is_int,
        total_n=n,
        tile_n=tile_n,
        tiles_per_split=tiles_per_split,
    )

    cost = pl.CostEstimate(
        flops=8 * n * c,
        transcendentals=n * (c + 2),
        bytes_accessed=n * c * in_bytes + n * 4
        + num_splits * _SUBLANES * _LANES * 4,
    )

    needed = c_pad * (2 * in_bytes + 3 * 4) * tile_n + (4 << 20)   # input dbuf + f32 temps + slack
    vmem_limit = int(min(max(needed, 32 << 20), (vmem_phys * 3) // 4))

    logits_map = lambda s, i: (jnp.minimum(s * tiles_per_split + i, last_block), 0)
    targets_map = lambda s, i: (jnp.minimum(s * tiles_per_split + i, last_block), 0)

    out = pl.pallas_call(
        kernel,
        out_shape=jax.ShapeDtypeStruct((num_splits * _SUBLANES, _LANES), jnp.float32),
        grid_spec=pltpu.PrefetchScalarGridSpec(
            num_scalar_prefetch=0,
            grid=(num_splits, tiles_per_split),
            in_specs=[
                pl.BlockSpec((tile_n, c), logits_map),
                pl.BlockSpec((tile_n, 1), targets_map),
            ],
            out_specs=pl.BlockSpec((_SUBLANES, _LANES), lambda s, i: (s, 0)),
        ),
        compiler_params=pltpu.CompilerParams(
            # On v7x the leading size-2 axis shards across both TensorCores;
            # (pltpu.CORE_PARALLEL could be tried there once profiled).
            dimension_semantics=("parallel", "arbitrary"),
            vmem_limit_bytes=vmem_limit,
        ),
        cost_estimate=cost,
    )(logits, targets_2d)

    total = jnp.sum(out[0::_SUBLANES, 0])   # one partial sum per split block
    if reduction == "mean":
        return total / n
    elif reduction == "sum":
        return total
    else:
        # TODO(synk): reduction='none' (per-row output) needs a per-tile output block.
        raise NotImplementedError("reduction='none' not implemented in the Pallas kernel")


def _focal_loss_ref(logits, targets, alpha=1.0, gamma=2.0):
    # pure-JAX reference mirroring F.cross_entropy(reduction='none') + focal terms
    logp = jax.nn.log_softmax(logits.astype(jnp.float32), axis=-1)
    ce = -jnp.take_along_axis(logp, targets[:, None].astype(jnp.int32), axis=-1)[:, 0]
    pt = jnp.exp(-ce)
    return jnp.mean(alpha * (1.0 - pt) ** gamma * ce)


if __name__ == "__main__":
    key = jax.random.PRNGKey(0)
    k_logits, k_targets = jax.random.split(key)

    N, C = 16, 32  # small synthetic batch: 16 samples, 32 classes
    logits = jax.random.normal(k_logits, (N, C), dtype=jnp.float32)
    targets = jax.random.randint(k_targets, (N,), 0, C, dtype=jnp.int32)

    loss = focal_loss(logits, targets, alpha=1.0, gamma=2.0)
    loss = jax.block_until_ready(loss)

    ref = _focal_loss_ref(logits, targets, alpha=1.0, gamma=2.0)
    assert jnp.allclose(loss, ref, rtol=1e-5, atol=1e-5), (loss, ref)

    print("KERNEL_OK")
</pallas_src>

<mosaic_0001>
module attributes {stable_mosaic.version = 11 : i64} {
  func.func @_focal_loss_kernel(%arg0: i32, %arg1: i32, %arg2: memref<16x32xf32, #tpu.memory_space<vmem>>, %arg3: memref<16x1xi32, #tpu.memory_space<vmem>>, %arg4: memref<8x128xf32, #tpu.memory_space<vmem>>) attributes {dimension_semantics = [#tpu.dimension_semantics<parallel>, #tpu.dimension_semantics<arbitrary>], iteration_bounds = array<i64: 1, 1>, scalar_prefetch = 0 : i64, scratch_operands = 0 : i64, tpu.core_type = #tpu.core_type<tc>, window_params = [{transform_indices = @transform_0, window_bounds = array<i64: 16, 32>}, {transform_indices = @transform_1, window_bounds = array<i64: 16, 1>}, {transform_indices = @transform_2, window_bounds = array<i64: 8, 128>}]} {
    %c0_i32 = arith.constant 0 : i32
    %0 = arith.cmpi eq, %arg1, %c0_i32 : i32
    %1 = arith.extui %0 : i1 to i32
    %c0_i32_0 = arith.constant 0 : i32
    %2 = arith.cmpi ne, %1, %c0_i32_0 : i32
    scf.if %2 {
      %cst_20 = arith.constant 0.000000e+00 : f32
      %57 = vector.broadcast %cst_20 : f32 to vector<8x128xf32>
      %c0_21 = arith.constant 0 : index
      %c0_22 = arith.constant 0 : index
      %58 = vector.load %arg4[%c0_21, %c0_22] : memref<8x128xf32, #tpu.memory_space<vmem>>, vector<8x128xf32>
      tpu.vector_store %arg4[%c0_21, %c0_22], %57 {strides = array<i32>} : memref<8x128xf32, #tpu.memory_space<vmem>>, vector<8x128xf32>,
    } else {
    }
    %c1_i32 = arith.constant 1 : i32
    %3 = arith.muli %arg0, %c1_i32 : i32
    %4 = arith.addi %3, %arg1 : i32
    %c16_i32 = arith.constant 16 : i32
    %5 = arith.muli %4, %c16_i32 : i32
    %6 = tpu.iota {dimensions = array<i32: 0>} : vector<16x1xi32>
    %7 = vector.broadcast %5 : i32 to vector<16x1xi32>
    %8 = arith.addi %7, %6 : vector<16x1xi32>
    %c16_i32_1 = arith.constant 16 : i32
    %9 = vector.broadcast %c16_i32_1 : i32 to vector<16x1xi32>
    %10 = arith.cmpi slt, %8, %9 : vector<16x1xi32>
    %c0 = arith.constant 0 : index
    %c0_2 = arith.constant 0 : index
    %11 = vector.load %arg2[%c0, %c0_2] : memref<16x32xf32, #tpu.memory_space<vmem>>, vector<16x32xf32>
    %cst = arith.constant 0.000000e+00 : f32
    %12 = vector.shape_cast %10 : vector<16x1xi1> to vector<16x1xi1>
    %13 = vector.broadcast %12 : vector<16x1xi1> to vector<16x32xi1>
    %14 = vector.broadcast %cst : f32 to vector<16x32xf32>
    %15 = arith.select %13, %11, %14 : vector<16x32xi1>, vector<16x32xf32>
    %c0_3 = arith.constant 0 : index
    %c0_4 = arith.constant 0 : index
    %16 = vector.load %arg3[%c0_3, %c0_4] : memref<16x1xi32, #tpu.memory_space<vmem>>, vector<16x1xi32>
    %17 = tpu.iota {dimensions = array<i32: 1>} : vector<16x32xi32>
    %18 = vector.broadcast %16 : vector<16x1xi32> to vector<16x32xi32>
    %19 = arith.cmpi eq, %17, %18 : vector<16x32xi32>
    %cst_5 = arith.constant dense<0xFF800000> : vector<16xf32>
    %20 = vector.multi_reduction <maximumf>, %15, %cst_5 [1] : vector<16x32xf32> to vector<16xf32>
    %21 = vector.shape_cast %20 : vector<16xf32> to vector<16x1xf32>
    %22 = vector.broadcast %21 : vector<16x1xf32> to vector<16x32xf32>
    %23 = arith.subf %15, %22 : vector<16x32xf32>
    %24 = math.exp %23 : vector<16x32xf32>
    %cst_6 = arith.constant dense<0.000000e+00> : vector<16xf32>
    %25 = vector.multi_reduction <add>, %24, %cst_6 [1] : vector<16x32xf32> to vector<16xf32>
    %26 = vector.shape_cast %25 : vector<16xf32> to vector<16x1xf32>
    %cst_7 = arith.constant 0.000000e+00 : f32
    %27 = vector.broadcast %cst_7 : f32 to vector<16x32xf32>
    %28 = arith.select %19, %15, %27 : vector<16x32xi1>, vector<16x32xf32>
    %cst_8 = arith.constant dense<0.000000e+00> : vector<16xf32>
    %29 = vector.multi_reduction <add>, %28, %cst_8 [1] : vector<16x32xf32> to vector<16xf32>
    %30 = vector.shape_cast %29 : vector<16xf32> to vector<16x1xf32>
    %31 = math.log %26 : vector<16x1xf32>
    %32 = arith.addf %31, %21 : vector<16x1xf32>
    %33 = arith.subf %32, %30 : vector<16x1xf32>
    %cst_9 = arith.constant 0.000000e+00 : f32
    %34 = vector.broadcast %cst_9 : f32 to vector<16x1xf32>
    %35 = arith.maximumf %33, %34 : vector<16x1xf32>
    %cst_10 = arith.constant 0.000000e+00 : f32
    %36 = vector.broadcast %cst_10 : f32 to vector<16x1xf32>
    %37 = arith.subf %36, %35 : vector<16x1xf32>
    %38 = math.exp %37 : vector<16x1xf32>
    %cst_11 = arith.constant 1.000000e+00 : f32
    %39 = vector.broadcast %cst_11 : f32 to vector<16x1xf32>
    %40 = arith.subf %39, %38 : vector<16x1xf32>
    %cst_12 = arith.constant 0.000000e+00 : f32
    %41 = vector.broadcast %cst_12 : f32 to vector<16x1xf32>
    %42 = arith.maximumf %40, %41 : vector<16x1xf32>
    %43 = arith.mulf %42, %42 : vector<16x1xf32>
    %cst_13 = arith.constant 1.000000e+00 : f32
    %44 = vector.broadcast %cst_13 : f32 to vector<16x1xf32>
    %45 = arith.mulf %44, %43 : vector<16x1xf32>
    %46 = arith.mulf %45, %35 : vector<16x1xf32>
    %cst_14 = arith.constant 0.000000e+00 : f32
    %47 = vector.broadcast %cst_14 : f32 to vector<16x1xf32>
    %48 = arith.select %10, %46, %47 : vector<16x1xi1>, vector<16x1xf32>
    %c0_15 = arith.constant 0 : index
    %c0_16 = arith.constant 0 : index
    %49 = vector.load %arg4[%c0_15, %c0_16] : memref<8x128xf32, #tpu.memory_space<vmem>>, vector<8x128xf32>
    %50 = vector.shape_cast %48 : vector<16x1xf32> to vector<1x16x1xf32>
    %cst_17 = arith.constant dense<0.000000e+00> : vector<1xf32>
    %51 = vector.multi_reduction <add>, %50, %cst_17 [1, 2] : vector<1x16x1xf32> to vector<1xf32>
    %52 = vector.shape_cast %51 : vector<1xf32> to vector<1x1x1xf32>
    %53 = vector.extract %52[0, 0, 0] : f32 from vector<1x1x1xf32>
    %54 = vector.broadcast %53 : f32 to vector<8x128xf32>
    %55 = arith.addf %49, %54 : vector<8x128xf32>
    %c0_18 = arith.constant 0 : index
    %c0_19 = arith.constant 0 : index
    %56 = vector.load %arg4[%c0_18, %c0_19] : memref<8x128xf32, #tpu.memory_space<vmem>>, vector<8x128xf32>
    tpu.vector_store %arg4[%c0_18, %c0_19], %55 {strides = array<i32>} : memref<8x128xf32, #tpu.memory_space<vmem>>, vector<8x128xf32>,
    return
  }
  func.func @transform_0(%arg0: i32, %arg1: i32) -> (i32, i32) {
    %c1_i32 = arith.constant 1 : i32
    %0 = arith.muli %arg0, %c1_i32 : i32
    %1 = arith.addi %0, %arg1 : i32
    %c0_i32 = arith.constant 0 : i32
    %2 = arith.minsi %1, %c0_i32 : i32
    %c0_i32_0 = arith.constant 0 : i32
    %c0_i32_1 = arith.constant 0 : i32
    return %2, %c0_i32_0 : i32, i32
  }
  func.func @transform_1(%arg0: i32, %arg1: i32) -> (i32, i32) {
    %c1_i32 = arith.constant 1 : i32
    %0 = arith.muli %arg0, %c1_i32 : i32
    %1 = arith.addi %0, %arg1 : i32
    %c0_i32 = arith.constant 0 : i32
    %2 = arith.minsi %1, %c0_i32 : i32
    %c0_i32_0 = arith.constant 0 : i32
    %c0_i32_1 = arith.constant 0 : i32
    return %2, %c0_i32_0 : i32, i32
  }
  func.func @transform_2(%arg0: i32, %arg1: i32) -> (i32, i32) {
    %c0_i32 = arith.constant 0 : i32
    %c0_i32_0 = arith.constant 0 : i32
    return %arg0, %c0_i32 : i32, i32
  }
}

</mosaic_0001>

<bundles_post_ra>
// kernel: tpu_custom_call.1
= control target key start
LH: loop header
LB: loop body
LE: loop exit
PB: predicated region body
PF: predicated region fallthrough
CT: control target
= control target key end

     0   :  { %vm111_vm0 = vcmask 261120   ;;  %v254_v3 = vmov 0   ;;  %s292_s0 = inlined_call_operand.vmem [shape: f32[16,32], index: 0, kind: input, shape index: {}]   ;;  %s293_s1 = inlined_call_operand.vmem [shape: s32[16,1], index: 1, kind: input, shape index: {}]   ;;  %s294_s2 = inlined_call_operand.hbm [shape: f32[8,128], index: 2, kind: output, shape index: {}]  }
   0x1   :  { %v91_v0 = vld [vmem:[%s292_s0] sm:$0xff]  ;;  %214 = vset.pattern.permute.xlu1 %v254_v3  ;;  %215 = vset.pattern.permute.xlu0 %v254_v3 }
   0x2   :  { %v99_v1 = vld [vmem:[%s293_s1] sm:$0xff]  ;;  %v112_v2 = vsel %vm111_vm0, %v91_v0, -inf }
   0x3   :  { %7 = vsyncpa [#allocation3], 0  ;;  %113 = vmax.xlane.f32.xlu0 %v112_v2  ;;  %104 = vperm.xlu1 %214, %v99_v1   ;;  %v92_v4 = vld [vmem:[%s292_s0 + $0x8] sm:$0xff]  ;;  %v101_v7 = vlaneseq  ;;  %vm165_vm3 = vcmask 7168   ;;  %s255_s0 = smov [#allocation2]   ;;  %s188_s19 = sshll.u32 %s294_s2, 4  ;;  %s189_s19 = int_to_ptr.hbm [resolvable:$true] %s188_s19 }
   0x4   :  { %v115_v5 = vsel %vm111_vm0, %v92_v4, -inf  ;;  %v100_v6 = vld [vmem:[%s293_s1 + $0x8] sm:$0xff]  ;;  %s186_s1 = sshll.u32 %s255_s0, 4  ;;  %s187_s1 = int_to_ptr.vmem [resolvable:$true] %s186_s1 }
   0x5   :  { %v102_v8 = vand.u32 127, %v101_v7 }
   0xb   :  { %116 = vmax.xlane.f32.xlu0 %v115_v5  ;;  %107 = vperm.xlu1 %214, %v100_v6  }
  0x75   :  { %v105_v9 = vpop.permute.xlu1 %104 }
  0x76   :  { %v114_v10 = vpop.xlane.xlu0 %113  ;;  %vm109_vm1 = vcmp.eq.s32.totalorder %v102_v8, %v105_v9 }
  0x77   :  { %v118_v11 = vsub.f32 %v91_v0, %v114_v10  ;;  %v130_v12 = vsel %vm109_vm1, %v91_v0, 0.0 }
  0x78   :  { %v132_v13 = vsel %vm111_vm0, %v130_v12, 0.0 }
  0x79   :  { %v120_v14 = vmul.f32 1.442695, %v118_v11  ;;  %133 = vadd.xlane.f32.xlu0 %v132_v13 }
  0x7b   :  { %216 = vpow2.f32 %v120_v14 }
  0x7d   :  { %v108_v15 = vpop.permute.xlu1 %107 }
  0x7e   :  { %v117_v16 = vpop.xlane.xlu0 %116  ;;  %vm110_vm2 = vcmp.eq.s32.totalorder %v102_v8, %v108_v15 }
  0x7f   :  { %v119_v17 = vsub.f32 %v92_v4, %v117_v16  ;;  %v131_v18 = vsel %vm110_vm2, %v92_v4, 0.0 }
  0x80   :  { %v135_v19 = vsel %vm111_vm0, %v131_v18, 0.0 }
  0x81   :  { %v217_v20 = vpop.eup %216  ;;  %v122_v21 = vmul.f32 1.442695, %v119_v17  ;;  %136 = vadd.xlane.f32.xlu1 %v135_v19 }
  0x82   :  { %v124_v22 = vsel %vm111_vm0, %v217_v20, 0.0 }
  0x83   :  { %218 = vpow2.f32 %v122_v21  ;;  %125 = vadd.xlane.f32.xlu2 %v124_v22 }
  0x89   :  { %v219_v23 = vpop.eup %218 }
  0x8a   :  { %v127_v24 = vsel %vm111_vm0, %v219_v23, 0.0 }
  0x8b   :  { %128 = vadd.xlane.f32.xlu2 %v127_v24 }
  0xec   :  { %v134_v29 = vpop.xlane.xlu0 %133 }
  0xf4   :  { %v137_v38 = vpop.xlane.xlu1 %136 }
  0xf6   :  { %v126_v25 = vpop.xlane.xlu2 %125 }
  0xf7   :  { %220 = vlog2.f32 %v126_v25 }
  0xfd   :  { %v221_v26 = vpop.eup %220 }
  0xfe   :  { %v139_v27 = vmul.f32 0.6931472, %v221_v26  ;;  %v129_v28 = vpop.xlane.xlu2 %128 }
  0xff   :  { %222 = vlog2.f32 %v129_v28 }
 0x100   :  { %v142_v30 = vadd.f32 %v139_v27, %v114_v10 }
 0x102   :  { %v144_v31 = vsub.f32 %v142_v30, %v134_v29 }
 0x104   :  { %v146_v32 = vmax.f32 %v144_v31, 0.0 }
 0x105   :  { %v223_v33 = vpop.eup %222 }
 0x106   :  { %v141_v34 = vmul.f32 0.6931472, %v223_v33  ;;  %v148_v35 = vsub.f32 0.0, %v146_v32 }
 0x108   :  { %v143_v36 = vadd.f32 %v141_v34, %v117_v16  ;;  %v150_v37 = vmul.f32 1.442695, %v148_v35 }
 0x10a   :  { %v145_v39 = vsub.f32 %v143_v36, %v137_v38  ;;  %224 = vpow2.f32 %v150_v37 }
 0x10c   :  { %v147_v40 = vmax.f32 %v145_v39, 0.0 }
 0x10e   :  { %v149_v41 = vsub.f32 0.0, %v147_v40 }
 0x110   :  { %v225_v42 = vpop.eup %224  ;;  %v152_v43 = vmul.f32 1.442695, %v149_v41 }
 0x111   :  { %v154_v44 = vsub.f32 1.0, %v225_v42 }
 0x112   :  { %226 = vpow2.f32 %v152_v43 }
 0x113   :  { %v156_v45 = vmax.f32 %v154_v44, 0.0 }
 0x115   :  { %v158_v48 = vmul.f32 %v156_v45, %v156_v45 }
 0x117   :  { %v160_v51 = vmul.f32 %v158_v48, %v146_v32 }
 0x118   :  { %v227_v46 = vpop.eup %226 }
 0x119   :  { %v155_v47 = vsub.f32 1.0, %v227_v46  ;;  %v166_v53 = vsel %vm165_vm3, %v160_v51, 0.0 }
 0x11b   :  { %v157_v49 = vmax.f32 %v155_v47, 0.0 }
 0x11d   :  { %v159_v50 = vmul.f32 %v157_v49, %v157_v49 }
 0x11f   :  { %v161_v52 = vmul.f32 %v159_v50, %v147_v40 }
 0x121   :  { %v167_v54 = vsel %vm165_vm3, %v161_v52, 0.0 }
 0x122   :  { %v168_v55 = vadd.f32 %v167_v54, %v166_v53 }
 0x124   :  { %169 = vadd.xlane.f32.xlu2 %v168_v55 }
 0x197   :  { %v170_v56 = vpop.xlane.xlu2 %169 }
 0x198   :  { %v171_v57 = vrot.slane %v170_v56, 4 }
 0x19a   :  { %v172_v58 = vadd.f32 %v171_v57, %v170_v56 }
 0x19c   :  { %v173_v59 = vrot.slane %v172_v58, 2 }
 0x19e   :  { %v174_v60 = vadd.f32 %v173_v59, %v172_v58 }
 0x1a0   :  { %v175_v61 = vrot.slane %v174_v60, 1 }
 0x1a2   :  { %v176_v62 = vadd.f32 %v175_v61, %v174_v60 }
 0x1a4   :  { %209 = vpush %v176_v62 }
 0x1d5   :  { %s210_s20 = spop %209 }
 0x1d6   :  { %v178_v63 = vstv %s210_s20 }
 0x1d7   :  { %180 = vst [vmem:[#allocation2] sm:$0xff] %v178_v63 }
 0x1d8   :  { %191 = dma.vmem_to_hbm [thread:$0]  %s187_s1, 128, %s189_s19, [#allocation3]  }
 0x1d9   :  { %252 = dma.done.wait [#allocation3], 128  }
 0x1da   :  { %253 = vsyncadd [#allocation3], 4294967168 }
 0x1db   :  { %196 = vsyncpa [#allocation3], 1 }

</bundles_post_ra>
